<compile_context>
chip_gen: v6e
topology: v6e:2x2x1
jax: 0.10.0
libtpu: 0.0.40
codegen_flags: <defaults>
</compile_context>

<pallas_src>
import jax
import jax.numpy as jnp
from jax.experimental import pallas as pl
from jax.experimental.pallas import tpu as pltpu


_VMEM_BUDGET = 40 * 1024 * 1024   # conservative: fits v7x (64 MiB/TC)
_VMEM_LIMIT = 48 * 1024 * 1024    # scoped limit handed to the compiler


def _round_up(x, m):
    return ((x + m - 1) // m) * m


# ---------------------------------------------------------------------------
# Kernels
# ---------------------------------------------------------------------------
def _gcn_fused_kernel(a_ref, xw_ref, b_ref, o_ref):
    """Whole contraction in one shot: out = relu(A_tile @ XW + b)."""
    acc = jnp.dot(a_ref[...], xw_ref[...], preferred_element_type=jnp.float32)
    o_ref[...] = jnp.maximum(acc + b_ref[...], 0.0)


def _gcn_acc_kernel(a_ref, xw_ref, b_ref, o_ref, acc_ref):
    """Tiled contraction with f32 accumulator; bias+ReLU on the last k step."""
    k = pl.program_id(2)
    partial = jnp.dot(a_ref[...], xw_ref[...],
                      preferred_element_type=jnp.float32)

    @pl.when(k == 0)
    def _():
        acc_ref[...] = partial            # direct write, no zero-init pass

    @pl.when(k > 0)
    def _():
        acc_ref[...] += partial

    @pl.when(k == pl.num_programs(2) - 1)
    def _():
        o_ref[...] = jnp.maximum(acc_ref[...] + b_ref[...], 0.0)


# ---------------------------------------------------------------------------
# Plan selection
# ---------------------------------------------------------------------------
def _plan(n_pad, tn, mxu_bytes, budget=_VMEM_BUDGET):
    """Pick ("fused", tm, None) when the contraction fits VMEM, else
    ("acc", tm, tk)."""
    for cand in (1024, 512, 256, 128):
        tm = min(cand, n_pad)
        if n_pad % tm != 0:
            continue
        est = (2 * tm * n_pad * mxu_bytes     # A_hat row-slab (double-buffered)
               + 2 * n_pad * tn * mxu_bytes   # resident XW slab
               + 2 * tm * tn * 4              # f32 output tile
               + 2 * tn * 4)                  # bias
        if est <= budget:
            return ("fused", tm, None)

    for t in (1024, 512, 256):
        est = (2 * t * t * mxu_bytes          # A_hat tile
               + 2 * t * tn * mxu_bytes       # XW tile
               + 2 * t * tn * 4               # output tile
               + t * tn * 4                   # accumulator scratch
               + 2 * tn * 4)
        if est <= budget:
            return ("acc", t, t)
    return ("acc", 256, 256)


# ---------------------------------------------------------------------------
# Forward
# ---------------------------------------------------------------------------
def graphrfi_forward(x, edge_index, w, b, *, mxu_dtype=jnp.bfloat16):
    """x: [N, C] float32, edge_index: [2, E] int32, w: [C, H], b: [H]."""
    n, _ = x.shape
    h = w.shape[1]
    mxu_bytes = jnp.dtype(mxu_dtype).itemsize

    # ---- glue: normalized adjacency A_hat = D^{-1/2} (A + I) D^{-1/2} ----
    src, dst = edge_index[0], edge_index[1]
    loops = jnp.arange(n, dtype=edge_index.dtype)
    src = jnp.concatenate([src, loops])
    dst = jnp.concatenate([dst, loops])
    deg = jnp.zeros((n,), jnp.float32).at[dst].add(1.0)
    dinv = jnp.where(deg > 0, 1.0 / jnp.sqrt(deg), 0.0)
    norm = dinv[src] * dinv[dst]

    # ---- tile planning -------------------------------------------------
    h_pad = _round_up(h, 128)
    tn = h_pad if h_pad <= 512 else 512       # j axis usually collapses to 1
    h_pad = _round_up(h_pad, tn)

    n_pad = _round_up(n, 128)
    mode, tm, tk = _plan(n_pad, tn, mxu_bytes)
    if mode == "acc":
        n_pad = _round_up(n_pad, tm)          # tm == tk

    # ---- build A_hat directly in the MXU dtype at padded size ----------
    # (padded rows/cols stay zero; no intermediate f32 N^2 pass + cast)
    a_hat = jnp.zeros((n_pad, n_pad), mxu_dtype).at[dst, src].add(
        norm.astype(mxu_dtype))

    # ---- hoist X @ W (tiny [N, H]) out of the tiled kernel --------------
    xw = jnp.dot(x.astype(jnp.float32), w.astype(jnp.float32))
    xw = jnp.pad(xw, ((0, n_pad - n), (0, h_pad - h))).astype(mxu_dtype)

    b2d = jnp.pad(b.astype(jnp.float32), (0, h_pad - h)).reshape(1, h_pad)

    if mode == "fused":
        grid = (n_pad // tm, h_pad // tn)
        out = pl.pallas_call(
            _gcn_fused_kernel,
            out_shape=jax.ShapeDtypeStruct((n_pad, h_pad), jnp.float32),
            grid_spec=pltpu.PrefetchScalarGridSpec(
                num_scalar_prefetch=0,
                grid=grid,
                in_specs=[
                    # A_hat row-slab: streamed from HBM exactly once.
                    pl.BlockSpec((tm, n_pad), lambda i, j: (i, 0)),
                    # XW: whole contraction dim resident in VMEM.
                    pl.BlockSpec((n_pad, tn), lambda i, j: (0, j)),
                    pl.BlockSpec((1, tn), lambda i, j: (0, j)),
                ],
                out_specs=pl.BlockSpec((tm, tn), lambda i, j: (i, j)),
            ),
            compiler_params=pltpu.CompilerParams(
                dimension_semantics=("parallel", "parallel"),
                vmem_limit_bytes=_VMEM_LIMIT,
            ),
        )(a_hat, xw, b2d)
    else:
        grid = (n_pad // tm, h_pad // tn, n_pad // tk)
        out = pl.pallas_call(
            _gcn_acc_kernel,
            out_shape=jax.ShapeDtypeStruct((n_pad, h_pad), jnp.float32),
            grid_spec=pltpu.PrefetchScalarGridSpec(
                num_scalar_prefetch=0,
                grid=grid,
                in_specs=[
                    pl.BlockSpec((tm, tk), lambda i, j, k: (i, k)),  # A_hat
                    pl.BlockSpec((tk, tn), lambda i, j, k: (k, j)),  # XW
                    pl.BlockSpec((1, tn), lambda i, j, k: (0, j)),   # bias
                ],
                out_specs=pl.BlockSpec((tm, tn), lambda i, j, k: (i, j)),
                scratch_shapes=[pltpu.VMEM((tm, tn), jnp.float32)],
            ),
            compiler_params=pltpu.CompilerParams(
                dimension_semantics=("parallel", "parallel", "arbitrary"),
                vmem_limit_bytes=_VMEM_LIMIT,
            ),
        )(a_hat, xw, b2d)

    return out[:n, :h]


def get_embedding(x, edge_index, w, b, nodes=None):
    out = graphrfi_forward(x, edge_index, w, b)
    return out if nodes is None else out[nodes]


if __name__ == "__main__":
    # Small synthetic problem: N nodes, C input features, H hidden channels.
    N, C, H, E = 16, 8, 32, 48

    key = jax.random.PRNGKey(0)
    kx, ke, kw, kb = jax.random.split(key, 4)

    x = jax.random.normal(kx, (N, C), dtype=jnp.float32)
    edge_index = jax.random.randint(ke, (2, E), 0, N, dtype=jnp.int32)

    # Deterministic parameter init (Glorot-style W, zero bias), mirroring
    # GCNConv's default parameterization.
    limit = (6.0 / (C + H)) ** 0.5
    w = jax.random.uniform(kw, (C, H), minval=-limit, maxval=limit,
                           dtype=jnp.float32)
    b = jnp.zeros((H,), jnp.float32)

    out = graphrfi_forward(x, edge_index, w, b)
    jax.block_until_ready(out)

    # Pure-JAX f32 reference (same math, no Pallas, no bf16) for validation.
    src_r = jnp.concatenate([edge_index[0], jnp.arange(N, dtype=jnp.int32)])
    dst_r = jnp.concatenate([edge_index[1], jnp.arange(N, dtype=jnp.int32)])
    deg_r = jnp.zeros((N,), jnp.float32).at[dst_r].add(1.0)
    dinv_r = jnp.where(deg_r > 0, 1.0 / jnp.sqrt(deg_r), 0.0)
    a_ref = jnp.zeros((N, N), jnp.float32).at[dst_r, src_r].add(
        dinv_r[src_r] * dinv_r[dst_r])
    ref = jnp.maximum(a_ref @ (x @ w) + b, 0.0)

    assert out.shape == (N, H)
    assert bool(jnp.all(out >= 0.0))                           # ReLU output
    assert bool(jnp.allclose(out, ref, atol=5e-2, rtol=5e-2))  # bf16 MXU inputs
    print("KERNEL_OK")
</pallas_src>

<mosaic_0001>
module attributes {stable_mosaic.version = 11 : i64} {
  func.func @_gcn_fused_kernel(%arg0: i32, %arg1: i32, %arg2: memref<128x128xbf16, #tpu.memory_space<vmem>>, %arg3: memref<128x128xbf16, #tpu.memory_space<vmem>>, %arg4: memref<1x128xf32, #tpu.memory_space<vmem>>, %arg5: memref<128x128xf32, #tpu.memory_space<vmem>>) attributes {dimension_semantics = [#tpu.dimension_semantics<parallel>, #tpu.dimension_semantics<parallel>], iteration_bounds = array<i64: 1, 1>, scalar_prefetch = 0 : i64, scratch_operands = 0 : i64, tpu.core_type = #tpu.core_type<tc>, window_params = [{transform_indices = @transform_0, window_bounds = array<i64: 128, 128>}, {transform_indices = @transform_1, window_bounds = array<i64: 128, 128>}, {transform_indices = @transform_2, window_bounds = array<i64: 1, 128>}, {transform_indices = @transform_3, window_bounds = array<i64: 128, 128>}]} {
    %c0 = arith.constant 0 : index
    %c0_0 = arith.constant 0 : index
    %0 = vector.load %arg2[%c0, %c0_0] : memref<128x128xbf16, #tpu.memory_space<vmem>>, vector<128x128xbf16>
    %c0_1 = arith.constant 0 : index
    %c0_2 = arith.constant 0 : index
    %1 = vector.load %arg3[%c0_1, %c0_2] : memref<128x128xbf16, #tpu.memory_space<vmem>>, vector<128x128xbf16>
    %cst = arith.constant dense<0.000000e+00> : vector<128x128xf32>
    %2 = tpu.matmul %0, %1, %cst {dimension_numbers = #tpu.dot_dimension_numbers<[1], [0], [0], [1], [0, 0, 1, 1], [], []>} : vector<128x128xbf16>, vector<128x128xbf16>, vector<128x128xf32> -> vector<128x128xf32>
    %c0_3 = arith.constant 0 : index
    %c0_4 = arith.constant 0 : index
    %3 = vector.load %arg4[%c0_3, %c0_4] : memref<1x128xf32, #tpu.memory_space<vmem>>, vector<1x128xf32>
    %4 = vector.broadcast %3 : vector<1x128xf32> to vector<128x128xf32>
    %5 = arith.addf %2, %4 : vector<128x128xf32>
    %cst_5 = arith.constant 0.000000e+00 : f32
    %6 = vector.broadcast %cst_5 : f32 to vector<128x128xf32>
    %7 = arith.maximumf %5, %6 : vector<128x128xf32>
    %c0_6 = arith.constant 0 : index
    %c0_7 = arith.constant 0 : index
    %8 = vector.load %arg5[%c0_6, %c0_7] : memref<128x128xf32, #tpu.memory_space<vmem>>, vector<128x128xf32>
    tpu.vector_store %arg5[%c0_6, %c0_7], %7 {strides = array<i32>} : memref<128x128xf32, #tpu.memory_space<vmem>>, vector<128x128xf32>,
    return
  }
  func.func @transform_0(%arg0: i32, %arg1: i32) -> (i32, i32) {
    %c0_i32 = arith.constant 0 : i32
    %c0_i32_0 = arith.constant 0 : i32
    return %arg0, %c0_i32 : i32, i32
  }
  func.func @transform_1(%arg0: i32, %arg1: i32) -> (i32, i32) {
    %c0_i32 = arith.constant 0 : i32
    %c0_i32_0 = arith.constant 0 : i32
    return %c0_i32, %arg1 : i32, i32
  }
  func.func @transform_2(%arg0: i32, %arg1: i32) -> (i32, i32) {
    %c0_i32 = arith.constant 0 : i32
    %c0_i32_0 = arith.constant 0 : i32
    return %c0_i32, %arg1 : i32, i32
  }
  func.func @transform_3(%arg0: i32, %arg1: i32) -> (i32, i32) {
    %c0_i32 = arith.constant 0 : i32
    return %arg0, %arg1 : i32, i32
  }
}

</mosaic_0001>

<bundles_post_ra>
// kernel: tpu_custom_call.1
= control target key start
LH: loop header
LB: loop body
LE: loop exit
PB: predicated region body
PF: predicated region fallthrough
CT: control target
= control target key end

     0   :  { %8 = vsyncpa [#allocation3], 0  ;;  %s535_s0 = inlined_call_operand.hbm [shape: bf16[128,128], index: 0, kind: input, shape index: {}]   ;;  %s536_s1 = inlined_call_operand.hbm [shape: bf16[128,128], index: 1, kind: input, shape index: {}]   ;;  %s537_s2 = inlined_call_operand.vmem [shape: f32[1,128], index: 2, kind: input, shape index: {}]   ;;  %s538_s3 = inlined_call_operand.hbm [shape: f32[128,128], index: 3, kind: output, shape index: {}]  }
   0x1   :  { %9 = vsyncpa [#allocation6], 0 }
   0x2   :  { %10 = vsyncpa [#allocation4], 0  ;;  %s496_s12 = smov [#allocation2]  }
   0x3   :  { %s16_s13 = sshll.u32 %s496_s12, 4  ;;  %s17_s13 = int_to_ptr.vmem [resolvable:$true] %s16_s13 }
   0x4   :  { %s438_s14 = scalar_lea.vmem %s17_s13, 1024  ;;  %p443_p1 = scmp.lt.s32.totalorder %s17_s13, %s17_s13 }
   0x5   :  { %p439_p0 = scmp.ne.s32.totalorder %s17_s13, %s438_s14  ;;  %p444_p2 = scmp.lt.s32.totalorder %s438_s14, %s438_s14 }
   0x7   :  { %p445_p3 = por %p444_p2, %p443_p1 }
   0x9   :  { %p446_p4 = pnand %p445_p3, %p439_p0 }
   0xb   :  { %449 = shalt.err (!%p446_p4)
}
   0xc   :  { %s497_s15 = smov 64   ;;  %s498_s16 = smov 4  }
   0xd   :  { %22 = dma.hbm_to_vmem [thread:$0]  %s535_s0, 1024, %s17_s13, [#allocation3], %s497_s15, %s497_s15, %s498_s16  }
   0xe   :  { %s499_s19 = smov [#allocation5]  }
   0xf   :  { %s28_s20 = sshll.u32 %s499_s19, 4  ;;  %s29_s20 = int_to_ptr.vmem [resolvable:$true] %s28_s20 }
  0x10   :  { %s458_s21 = scalar_lea.vmem %s29_s20, 1024  ;;  %p463_p6 = scmp.lt.s32.totalorder %s29_s20, %s29_s20 }
  0x11   :  { %p459_p5 = scmp.ne.s32.totalorder %s29_s20, %s458_s21  ;;  %p464_p7 = scmp.lt.s32.totalorder %s458_s21, %s458_s21 }
  0x13   :  { %p465_p8 = por %p464_p7, %p463_p6 }
  0x15   :  { %p466_p9 = pnand %p465_p8, %p459_p5 }
  0x17   :  { %469 = shalt.err (!%p466_p9)
}
  0x18   :  { %34 = dma.hbm_to_vmem [thread:$0]  %s536_s1, 1024, %s29_s20, [#allocation6], %s497_s15, %s497_s15, %s498_s16  }
  0x19   :  { %490 = dma.done.wait [#allocation3], 1024  }
  0x1a   :  { %491 = vsyncadd [#allocation3], 4294966272 }
  0x1b   :  { %492 = dma.done.wait [#allocation6], 1024  }
  0x1c   :  { %493 = vsyncadd [#allocation6], 4294966272  ;;  %v414_v0 = vld [vmem:[#allocation5 + $0x38] sm:$0xff]   ;;  %v415_v1 = vld [vmem:[#allocation5 + $0x30] sm:$0xff]  }
  0x1d   :  { %359 = vmatprep.subr.bf16.mxu0 %v414_v0  ;;  %391 = vmatprep.subr.bf16.mxu1 %v414_v0  ;;  %v416_v2 = vld [vmem:[#allocation5 + $0x28] sm:$0xff]   ;;  %v417_v3 = vld [vmem:[#allocation5 + $0x20] sm:$0xff]   ;;  %v418_v6 = vld [vmem:[#allocation5 + $0x18] sm:$0xff]  }
  0x1e   :  { %360 = vmatpush3.bf16.msra.mxu0 %v414_v0  ;;  %399 = vmatpush3.bf16.msra.mxu1 %v414_v0  ;;  %v422_v4 = vld [vmem:[#allocation2] sm:$0xff]   ;;  %v419_v7 = vld [vmem:[#allocation5 + $0x10] sm:$0xff]   ;;  %v420_v8 = vld [vmem:[#allocation5 + $0x8] sm:$0xff]  }
  0x1f   :  { %361 = vmatprep.subr.bf16.mxu0 %v415_v1  ;;  %392 = vmatprep.subr.bf16.mxu1 %v415_v1  ;;  %v423_v5 = vld [vmem:[#allocation2 + $0x20] sm:$0xff]   ;;  %v424_v10 = vld [vmem:[#allocation2 + $0x8] sm:$0xff]   ;;  %v426_v12 = vld [vmem:[#allocation2 + $0x10] sm:$0xff]  }
  0x20   :  { %375 = vmatprep.mubr.bf16.mxu0 %v422_v4  ;;  %383 = vmatprep.mubr.bf16.mxu1 %v423_v5  ;;  %v421_v9 = vld [vmem:[#allocation5] sm:$0xff]   ;;  %v425_v11 = vld [vmem:[#allocation2 + $0x28] sm:$0xff]   ;;  %v427_v13 = vld [vmem:[#allocation2 + $0x30] sm:$0xff]  }
  0x21   :  { %v428_v14 = vld [vmem:[#allocation2 + $0x18] sm:$0xff]   ;;  %v326_v16 = vld [vmem:[%s537_s2] ss:$0 sm:$0xff]  ;;  %s500_s2 = smov [#allocation7]  }
  0x22   :  { %362 = vmatpush3.bf16.msra.mxu0 %v415_v1  ;;  %400 = vmatpush3.bf16.msra.mxu1 %v415_v1  ;;  %v429_v15 = vld [vmem:[#allocation2 + $0x38] sm:$0xff]   ;;  %s313_s24 = sshll.u32 %s500_s2, 4  ;;  %s314_s24 = int_to_ptr.vmem [resolvable:$true] %s313_s24 }
  0x23   :  { %363 = vmatprep.subr.bf16.mxu0 %v416_v2  ;;  %393 = vmatprep.subr.bf16.mxu1 %v416_v2  ;;  %s470_s25 = scalar_lea.vmem %s314_s24, 2048  ;;  %p475_p11 = scmp.lt.s32.totalorder %s314_s24, %s314_s24 }
  0x24   :  { %p471_p10 = scmp.ne.s32.totalorder %s314_s24, %s470_s25  ;;  %p476_p12 = scmp.lt.s32.totalorder %s470_s25, %s470_s25 }
  0x26   :  { %364 = vmatpush3.bf16.msra.mxu0 %v416_v2  ;;  %401 = vmatpush3.bf16.msra.mxu1 %v416_v2  ;;  %p477_p13 = por %p476_p12, %p475_p11 }
  0x27   :  { %365 = vmatprep.subr.bf16.mxu0 %v417_v3  ;;  %394 = vmatprep.subr.bf16.mxu1 %v417_v3 }
  0x28   :  { %p478_p0 = pnand %p477_p13, %p471_p10 }
  0x2a   :  { %366 = vmatpush3.bf16.msra.mxu0 %v417_v3  ;;  %402 = vmatpush3.bf16.msra.mxu1 %v417_v3 }
  0x2b   :  { %367 = vmatprep.subr.bf16.mxu0 %v418_v6  ;;  %395 = vmatprep.subr.bf16.mxu1 %v418_v6 }
  0x2e   :  { %368 = vmatpush3.bf16.msra.mxu0 %v418_v6  ;;  %403 = vmatpush3.bf16.msra.mxu1 %v418_v6 }
  0x2f   :  { %369 = vmatprep.subr.bf16.mxu0 %v419_v7  ;;  %396 = vmatprep.subr.bf16.mxu1 %v419_v7 }
  0x32   :  { %370 = vmatpush3.bf16.msra.mxu0 %v419_v7  ;;  %404 = vmatpush3.bf16.msra.mxu1 %v419_v7 }
  0x33   :  { %371 = vmatprep.subr.bf16.mxu0 %v420_v8  ;;  %397 = vmatprep.subr.bf16.mxu1 %v420_v8 }
  0x36   :  { %372 = vmatpush3.bf16.msra.mxu0 %v420_v8  ;;  %405 = vmatpush3.bf16.msra.mxu1 %v420_v8 }
  0x37   :  { %373 = vmatprep.subr.bf16.mxu0 %v421_v9  ;;  %398 = vmatprep.subr.bf16.mxu1 %v421_v9 }
  0x3a   :  { %374 = vmatpush3.bf16.msra.mxu0 %v421_v9  ;;  %406 = vmatpush3.bf16.msra.mxu1 %v421_v9 }
  0x3d   :  { %376 = vmatmul.mubr.bf16.vlgmr.msra.gmra.mxu0 %v424_v10  ;;  %384 = vmatmul.mubr.bf16.vlgmr.msra.gmra.mxu1 %v425_v11 }
  0x3e   :  { %379 = vmatprep.mubr.bf16.mxu0 %v426_v12  ;;  %387 = vmatprep.mubr.bf16.mxu1 %v427_v13 }
  0x45   :  { %380 = vmatmul.mubr.bf16.gmra.mxu0 %v428_v14  ;;  %388 = vmatmul.mubr.bf16.gmra.mxu1 %v429_v15 }
  0xfd   :  { %v377_v17 = vpop.f32.mrf.mxu0  ;;  %v385_v18 = vpop.f32.mrf.mxu1 }
  0xfe   :  { %v222_v19 = vadd.f32 %v377_v17, %v326_v16  ;;  %v254_v20 = vadd.f32 %v385_v18, %v326_v16 }
  0xff   :  { %v213_v21 = vpop.f32.mrf.mxu0  ;;  %v245_v22 = vpop.f32.mrf.mxu1 }
 0x100   :  { %v278_v23 = vmax.f32 %v222_v19, 0.0  ;;  %v286_v24 = vmax.f32 %v254_v20, 0.0  ;;  %v214_v25 = vadd.f32 %v326_v16, %v213_v21  ;;  %v246_v26 = vadd.f32 %v326_v16, %v245_v22 }
 0x101   :  { %v378_v27 = vpop.f32.mrf.mxu0  ;;  %v386_v28 = vpop.f32.mrf.mxu1 }
 0x102   :  { %294 = vst [vmem:[#allocation7 + $0x10] sm:$0xff] %v278_v23  ;;  %302 = vst [vmem:[#allocation7 + $0x50] sm:$0xff] %v286_v24  ;;  %v276_v29 = vmax.f32 %v214_v25, 0.0  ;;  %v284_v30 = vmax.f32 %v246_v26, 0.0  ;;  %v225_v31 = vadd.f32 %v378_v27, %v326_v16  ;;  %v257_v32 = vadd.f32 %v386_v28, %v326_v16 }
 0x103   :  { %v216_v33 = vpop.f32.mrf.mxu0  ;;  %v248_v34 = vpop.f32.mrf.mxu1 }
 0x104   :  { %292 = vst [vmem:[#allocation7] sm:$0xff] %v276_v29  ;;  %300 = vst [vmem:[#allocation7 + $0x40] sm:$0xff] %v284_v30  ;;  %v279_v35 = vmax.f32 %v225_v31, 0.0  ;;  %v287_v36 = vmax.f32 %v257_v32, 0.0  ;;  %v217_v37 = vadd.f32 %v326_v16, %v216_v33  ;;  %v249_v38 = vadd.f32 %v326_v16, %v248_v34 }
 0x105   :  { %v381_v39 = vpop.f32.mrf.mxu0  ;;  %v389_v40 = vpop.f32.mrf.mxu1 }
 0x106   :  { %295 = vst [vmem:[#allocation7 + $0x18] sm:$0xff] %v279_v35  ;;  %303 = vst [vmem:[#allocation7 + $0x58] sm:$0xff] %v287_v36  ;;  %v277_v41 = vmax.f32 %v217_v37, 0.0  ;;  %v285_v42 = vmax.f32 %v249_v38, 0.0  ;;  %v238_v43 = vadd.f32 %v381_v39, %v326_v16  ;;  %v270_v44 = vadd.f32 %v389_v40, %v326_v16 }
 0x107   :  { %v229_v45 = vpop.f32.mrf.mxu0  ;;  %v261_v46 = vpop.f32.mrf.mxu1 }
 0x108   :  { %293 = vst [vmem:[#allocation7 + $0x8] sm:$0xff] %v277_v41  ;;  %301 = vst [vmem:[#allocation7 + $0x48] sm:$0xff] %v285_v42  ;;  %v282_v47 = vmax.f32 %v238_v43, 0.0  ;;  %v290_v48 = vmax.f32 %v270_v44, 0.0  ;;  %v230_v49 = vadd.f32 %v326_v16, %v229_v45  ;;  %v262_v50 = vadd.f32 %v326_v16, %v261_v46 }
 0x109   :  { %v382_v51 = vpop.f32.mrf.mxu0  ;;  %v390_v52 = vpop.f32.mrf.mxu1 }
 0x10a   :  { %298 = vst [vmem:[#allocation7 + $0x30] sm:$0xff] %v282_v47  ;;  %306 = vst [vmem:[#allocation7 + $0x70] sm:$0xff] %v290_v48  ;;  %v280_v53 = vmax.f32 %v230_v49, 0.0  ;;  %v288_v54 = vmax.f32 %v262_v50, 0.0  ;;  %v241_v55 = vadd.f32 %v382_v51, %v326_v16  ;;  %v273_v56 = vadd.f32 %v390_v52, %v326_v16 }
 0x10b   :  { %v232_v57 = vpop.f32.mrf.mxu0  ;;  %v264_v58 = vpop.f32.mrf.mxu1 }
 0x10c   :  { %296 = vst [vmem:[#allocation7 + $0x20] sm:$0xff] %v280_v53  ;;  %304 = vst [vmem:[#allocation7 + $0x60] sm:$0xff] %v288_v54  ;;  %v283_v59 = vmax.f32 %v241_v55, 0.0  ;;  %v291_v60 = vmax.f32 %v273_v56, 0.0  ;;  %v233_v61 = vadd.f32 %v326_v16, %v232_v57  ;;  %v265_v62 = vadd.f32 %v326_v16, %v264_v58 }
 0x10e   :  { %299 = vst [vmem:[#allocation7 + $0x38] sm:$0xff] %v283_v59  ;;  %307 = vst [vmem:[#allocation7 + $0x78] sm:$0xff] %v291_v60  ;;  %v281_v63 = vmax.f32 %v233_v61, 0.0  ;;  %v289_v0 = vmax.f32 %v265_v62, 0.0 }
 0x110   :  { %297 = vst [vmem:[#allocation7 + $0x28] sm:$0xff] %v281_v63  ;;  %305 = vst [vmem:[#allocation7 + $0x68] sm:$0xff] %v289_v0 }
 0x111   :  { %481 = shalt.err (!%p478_p0)
}
 0x112   :  { %s501_s26 = smov 128   ;;  %s502_s27 = smov 8  }
 0x113   :  { %319 = dma.vmem_to_hbm [thread:$0]  %s314_s24, 2048, %s538_s3, [#allocation4], %s501_s26, %s501_s26, %s502_s27  }
 0x114   :  { %494 = dma.done.wait [#allocation4], 2048  }
 0x115   :  { %495 = vsyncadd [#allocation4], 4294965248 }
 0x116   :  { %323 = vsyncpa [#allocation3], 1 }
 0x117   :  { %324 = vsyncpa [#allocation6], 1 }
 0x118   :  { %325 = vsyncpa [#allocation4], 1 }

</bundles_post_ra>
